<compile_context>
chip_gen: v5e
topology: v5e:2x2
jax: 0.10.0
libtpu: 0.0.40
codegen_flags: <defaults>
</compile_context>

<pallas_src>
import functools

import jax
import jax.numpy as jnp
from jax.experimental import pallas as pl
from jax.experimental.pallas import tpu as pltpu


_EMB_DIM = 32  # get_embedding_dim() in the PyTorch module


def _round_up(n, m):
    return ((n + m - 1) // m) * m


# ---------------------------------------------------------------------------
# Kernel bodies
# ---------------------------------------------------------------------------
def _hidden_layers(x_ref, w1_ref, b1_ref, w2_ref, b2_ref):
    # Cast activations to bf16 in-kernel (VPU has slack; kernel is DMA-bound),
    # accumulate on the MXU in f32, add f32 bias, relu on the VPU.
    xb = x_ref[...].astype(jnp.bfloat16)
    h1 = jnp.dot(xb, w1_ref[...], preferred_element_type=jnp.float32)
    h1 = jnp.maximum(h1 + b1_ref[...], 0.0)
    h2 = jnp.dot(h1.astype(jnp.bfloat16), w2_ref[...],
                 preferred_element_type=jnp.float32)
    return jnp.maximum(h2 + b2_ref[...], 0.0)


def _mlp_score_kernel(x_ref, w1_ref, b1_ref, w2_ref, b2_ref, w3_ref, b3_ref,
                      score_ref):
    h2 = _hidden_layers(x_ref, w1_ref, b1_ref, w2_ref, b2_ref)
    score_ref[...] = jnp.dot(h2.astype(jnp.bfloat16), w3_ref[...],
                             preferred_element_type=jnp.float32) + b3_ref[...]


def _mlp_score_emb_kernel(x_ref, w1_ref, b1_ref, w2_ref, b2_ref, w3_ref, b3_ref,
                          score_ref, emb_ref):
    h2 = _hidden_layers(x_ref, w1_ref, b1_ref, w2_ref, b2_ref)
    emb_ref[...] = h2  # direct (bit-exact) embedding store, no identity matmul
    score_ref[...] = jnp.dot(h2.astype(jnp.bfloat16), w3_ref[...],
                             preferred_element_type=jnp.float32) + b3_ref[...]


# ---------------------------------------------------------------------------
# Tiling heuristics
# ---------------------------------------------------------------------------
def _pick_block_m(batch, bytes_per_row, requested):
    """Largest batch tile that fits a conservative streamed-block VMEM budget.

    bytes_per_row counts the double-buffered, per-row streamed operands
    (x block + output block(s)).  24 MiB keeps us safely under the scoped
    VMEM limit we request below on v5e/v6e/v7x; resident weights are tiny.
    """
    vmem_budget = 24 * 1024 * 1024
    bm_vmem = max(int(vmem_budget // max(bytes_per_row, 1)), 8)
    align = 8 if batch < 16 else 16  # 16-row alignment for bf16 sublane packing
    bm = _round_up(max(min(requested, bm_vmem, batch), 1), align)
    # Only force a >=2-step grid (work for v7x's second TensorCore) when the
    # batch is big enough that each half still amortizes the per-step cost.
    # Single-TC v5e/v6e prefer one big block; at B>=512 the extra step is noise.
    if batch >= 512 and pl.cdiv(batch, bm) < 2:
        bm = _round_up(pl.cdiv(batch, 2), align)
    return bm


# ---------------------------------------------------------------------------
# Wrapper
# ---------------------------------------------------------------------------
def mlp_forward(x, params, *, last=False, block_m=2048):
    """Fused Pallas forward for MLPModel.

    x:      [B, nb_features] float32 (bf16 also accepted)
    params: dict with w1 [F,64], b1 [1,64], w2 [64,32], b2 [1,32],
            w3 [32,C], b3 [1,C]  (weights pre-transposed vs. PyTorch Linear).
    Returns score [B, C]  (and the bit-exact 32-d embedding if last=True).
    """
    B, F = x.shape
    H1 = params["w1"].shape[1]
    H2 = params["w2"].shape[1]
    C = params["w3"].shape[1]

    # Weights are tiny; one-time bf16 casts in the wrapper are negligible.
    # Activations (x) are NOT cast here -- streamed f32, cast in-kernel.
    w1 = params["w1"].astype(jnp.bfloat16)
    w2 = params["w2"].astype(jnp.bfloat16)
    w3 = params["w3"].astype(jnp.bfloat16)
    b1 = params["b1"].astype(jnp.float32)
    b2 = params["b2"].astype(jnp.float32)
    b3 = params["b3"].astype(jnp.float32)

    # Double-buffered streamed bytes per batch row: x (f32) + score (f32) [+ emb].
    bytes_per_row = 2 * 4 * (F + C + (H2 if last else 0))
    bm = _pick_block_m(B, bytes_per_row, block_m)
    grid = (pl.cdiv(B, bm),)

    rows = lambda i: (i, 0)   # tile over batch rows
    full = lambda i: (0, 0)   # weights / biases resident across all grid steps

    in_specs = [
        pl.BlockSpec((bm, F), rows),    # x  (f32, cast to bf16 in-kernel)
        pl.BlockSpec((F, H1), full),    # w1 (bf16)
        pl.BlockSpec((1, H1), full),    # b1 (f32)
        pl.BlockSpec((H1, H2), full),   # w2 (bf16)
        pl.BlockSpec((1, H2), full),    # b2 (f32)
        pl.BlockSpec((H2, C), full),    # w3 (bf16)
        pl.BlockSpec((1, C), full),     # b3 (f32)
    ]

    cparams = pltpu.CompilerParams(
        dimension_semantics=("parallel",),
        vmem_limit_bytes=48 * 1024 * 1024,  # above our usage, below physical VMEM
    )

    if last:
        score, emb = pl.pallas_call(
            _mlp_score_emb_kernel,
            out_shape=(jax.ShapeDtypeStruct((B, C), jnp.float32),
                       jax.ShapeDtypeStruct((B, H2), jnp.float32)),
            grid_spec=pltpu.PrefetchScalarGridSpec(
                num_scalar_prefetch=0,
                grid=grid,
                in_specs=in_specs,
                out_specs=(pl.BlockSpec((bm, C), rows),
                           pl.BlockSpec((bm, H2), rows)),
            ),
            compiler_params=cparams,
        )(x, w1, b1, w2, b2, w3, b3)
        return score, emb

    score = pl.pallas_call(
        _mlp_score_kernel,
        out_shape=jax.ShapeDtypeStruct((B, C), jnp.float32),
        grid_spec=pltpu.PrefetchScalarGridSpec(
            num_scalar_prefetch=0,
            grid=grid,
            in_specs=in_specs,
            out_specs=pl.BlockSpec((bm, C), rows),
        ),
        compiler_params=cparams,
    )(x, w1, b1, w2, b2, w3, b3)
    return score


# ---------------------------------------------------------------------------
# Params / reference
# ---------------------------------------------------------------------------
def init_params(key, nb_features, nb_classes):
    """Deterministic synthetic init (uniform, PyTorch-Linear-like fan-in scaling)."""
    ks = jax.random.split(key, 6)

    def lin(kw, kb, fan_in, fan_out):
        bound = 1.0 / jnp.sqrt(float(fan_in))
        w = jax.random.uniform(kw, (fan_in, fan_out), jnp.float32, -bound, bound)
        b = jax.random.uniform(kb, (1, fan_out), jnp.float32, -bound, bound)
        return w, b

    w1, b1 = lin(ks[0], ks[1], nb_features, 64)
    w2, b2 = lin(ks[2], ks[3], 64, _EMB_DIM)
    w3, b3 = lin(ks[4], ks[5], _EMB_DIM, nb_classes)
    return {"w1": w1, "b1": b1, "w2": w2, "b2": b2, "w3": w3, "b3": b3}


def mlp_reference(x, p):
    # Mirrors the kernel numerics (bf16 matmul operands, f32 accumulate/bias).
    h1 = jnp.dot(x.astype(jnp.bfloat16), p["w1"].astype(jnp.bfloat16),
                 preferred_element_type=jnp.float32) + p["b1"]
    h1 = jnp.maximum(h1, 0.0)
    h2 = jnp.dot(h1.astype(jnp.bfloat16), p["w2"].astype(jnp.bfloat16),
                 preferred_element_type=jnp.float32) + p["b2"]
    h2 = jnp.maximum(h2, 0.0)
    score = jnp.dot(h2.astype(jnp.bfloat16), p["w3"].astype(jnp.bfloat16),
                    preferred_element_type=jnp.float32) + p["b3"]
    return score, h2


if __name__ == "__main__":
    key = jax.random.PRNGKey(0)
    nb_features, nb_classes, batch = 32, 10, 8

    k_params, k_x = jax.random.split(key)
    params = init_params(k_params, nb_features, nb_classes)
    x = jax.random.normal(k_x, (batch, nb_features), jnp.float32)

    fwd_last = jax.jit(functools.partial(mlp_forward, last=True))
    fwd = jax.jit(mlp_forward)

    score, emb = fwd_last(x, params)
    score_only = fwd(x, params)
    jax.block_until_ready((score, emb, score_only))

    ref_score, ref_emb = mlp_reference(x, params)
    assert score.shape == (batch, nb_classes)
    assert emb.shape == (batch, _EMB_DIM)
    assert score_only.shape == (batch, nb_classes)
    # bf16 matmul operands -> loosened tolerances (accumulation is f32).
    assert jnp.allclose(score, ref_score, atol=2e-2, rtol=2e-2)
    assert jnp.allclose(emb, ref_emb, atol=2e-2, rtol=2e-2)
    assert jnp.allclose(score_only, score, atol=1e-6, rtol=1e-6)

    print("KERNEL_OK")
</pallas_src>

<mosaic_0001>
module attributes {stable_mosaic.version = 11 : i64} {
  func.func @_mlp_score_emb_kernel(%arg0: i32, %arg1: memref<8x32xf32, #tpu.memory_space<vmem>>, %arg2: memref<32x64xbf16, #tpu.memory_space<vmem>>, %arg3: memref<1x64xf32, #tpu.memory_space<vmem>>, %arg4: memref<64x32xbf16, #tpu.memory_space<vmem>>, %arg5: memref<1x32xf32, #tpu.memory_space<vmem>>, %arg6: memref<32x10xbf16, #tpu.memory_space<vmem>>, %arg7: memref<1x10xf32, #tpu.memory_space<vmem>>, %arg8: memref<8x10xf32, #tpu.memory_space<vmem>>, %arg9: memref<8x32xf32, #tpu.memory_space<vmem>>) attributes {dimension_semantics = [#tpu.dimension_semantics<parallel>], iteration_bounds = array<i64: 1>, scalar_prefetch = 0 : i64, scratch_operands = 0 : i64, tpu.core_type = #tpu.core_type<tc>, window_params = [{transform_indices = @transform_0, window_bounds = array<i64: 8, 32>}, {pipeline_mode = #tpu.pipeline_mode<synchronous>, transform_indices = @transform_1, window_bounds = array<i64: 32, 64>}, {pipeline_mode = #tpu.pipeline_mode<synchronous>, transform_indices = @transform_2, window_bounds = array<i64: 1, 64>}, {pipeline_mode = #tpu.pipeline_mode<synchronous>, transform_indices = @transform_3, window_bounds = array<i64: 64, 32>}, {pipeline_mode = #tpu.pipeline_mode<synchronous>, transform_indices = @transform_4, window_bounds = array<i64: 1, 32>}, {pipeline_mode = #tpu.pipeline_mode<synchronous>, transform_indices = @transform_5, window_bounds = array<i64: 32, 10>}, {pipeline_mode = #tpu.pipeline_mode<synchronous>, transform_indices = @transform_6, window_bounds = array<i64: 1, 10>}, {transform_indices = @transform_7, window_bounds = array<i64: 8, 10>}, {transform_indices = @transform_8, window_bounds = array<i64: 8, 32>}]} {
    %c0 = arith.constant 0 : index
    %c0_0 = arith.constant 0 : index
    %0 = vector.load %arg1[%c0, %c0_0] : memref<8x32xf32, #tpu.memory_space<vmem>>, vector<8x32xf32>
    %1 = arith.truncf %0 : vector<8x32xf32> to vector<8x32xbf16>
    %c0_1 = arith.constant 0 : index
    %c0_2 = arith.constant 0 : index
    %2 = vector.load %arg2[%c0_1, %c0_2] : memref<32x64xbf16, #tpu.memory_space<vmem>>, vector<32x64xbf16>
    %cst = arith.constant dense<0.000000e+00> : vector<8x64xf32>
    %3 = tpu.matmul %1, %2, %cst {dimension_numbers = #tpu.dot_dimension_numbers<[1], [0], [0], [1], [0, 0, 1, 1], [], []>} : vector<8x32xbf16>, vector<32x64xbf16>, vector<8x64xf32> -> vector<8x64xf32>
    %c0_3 = arith.constant 0 : index
    %c0_4 = arith.constant 0 : index
    %4 = vector.load %arg3[%c0_3, %c0_4] : memref<1x64xf32, #tpu.memory_space<vmem>>, vector<1x64xf32>
    %5 = vector.broadcast %4 : vector<1x64xf32> to vector<8x64xf32>
    %6 = arith.addf %3, %5 : vector<8x64xf32>
    %cst_5 = arith.constant 0.000000e+00 : f32
    %7 = vector.broadcast %cst_5 : f32 to vector<8x64xf32>
    %8 = arith.maximumf %6, %7 : vector<8x64xf32>
    %9 = arith.truncf %8 : vector<8x64xf32> to vector<8x64xbf16>
    %c0_6 = arith.constant 0 : index
    %c0_7 = arith.constant 0 : index
    %10 = vector.load %arg4[%c0_6, %c0_7] : memref<64x32xbf16, #tpu.memory_space<vmem>>, vector<64x32xbf16>
    %cst_8 = arith.constant dense<0.000000e+00> : vector<8x32xf32>
    %11 = tpu.matmul %9, %10, %cst_8 {dimension_numbers = #tpu.dot_dimension_numbers<[1], [0], [0], [1], [0, 0, 1, 1], [], []>} : vector<8x64xbf16>, vector<64x32xbf16>, vector<8x32xf32> -> vector<8x32xf32>
    %c0_9 = arith.constant 0 : index
    %c0_10 = arith.constant 0 : index
    %12 = vector.load %arg5[%c0_9, %c0_10] : memref<1x32xf32, #tpu.memory_space<vmem>>, vector<1x32xf32>
    %13 = vector.broadcast %12 : vector<1x32xf32> to vector<8x32xf32>
    %14 = arith.addf %11, %13 : vector<8x32xf32>
    %cst_11 = arith.constant 0.000000e+00 : f32
    %15 = vector.broadcast %cst_11 : f32 to vector<8x32xf32>
    %16 = arith.maximumf %14, %15 : vector<8x32xf32>
    %c0_12 = arith.constant 0 : index
    %c0_13 = arith.constant 0 : index
    %17 = vector.load %arg9[%c0_12, %c0_13] : memref<8x32xf32, #tpu.memory_space<vmem>>, vector<8x32xf32>
    tpu.vector_store %arg9[%c0_12, %c0_13], %16 {strides = array<i32>} : memref<8x32xf32, #tpu.memory_space<vmem>>, vector<8x32xf32>,
    %18 = arith.truncf %16 : vector<8x32xf32> to vector<8x32xbf16>
    %c0_14 = arith.constant 0 : index
    %c0_15 = arith.constant 0 : index
    %19 = vector.load %arg6[%c0_14, %c0_15] : memref<32x10xbf16, #tpu.memory_space<vmem>>, vector<32x10xbf16>
    %cst_16 = arith.constant dense<0.000000e+00> : vector<8x10xf32>
    %20 = tpu.matmul %18, %19, %cst_16 {dimension_numbers = #tpu.dot_dimension_numbers<[1], [0], [0], [1], [0, 0, 1, 1], [], []>} : vector<8x32xbf16>, vector<32x10xbf16>, vector<8x10xf32> -> vector<8x10xf32>
    %c0_17 = arith.constant 0 : index
    %c0_18 = arith.constant 0 : index
    %21 = vector.load %arg7[%c0_17, %c0_18] : memref<1x10xf32, #tpu.memory_space<vmem>>, vector<1x10xf32>
    %22 = vector.broadcast %21 : vector<1x10xf32> to vector<8x10xf32>
    %23 = arith.addf %20, %22 : vector<8x10xf32>
    %c0_19 = arith.constant 0 : index
    %c0_20 = arith.constant 0 : index
    %24 = vector.load %arg8[%c0_19, %c0_20] : memref<8x10xf32, #tpu.memory_space<vmem>>, vector<8x10xf32>
    tpu.vector_store %arg8[%c0_19, %c0_20], %23 {strides = array<i32>} : memref<8x10xf32, #tpu.memory_space<vmem>>, vector<8x10xf32>,
    return
  }
  func.func @transform_0(%arg0: i32) -> (i32, i32) {
    %c0_i32 = arith.constant 0 : i32
    %c0_i32_0 = arith.constant 0 : i32
    return %arg0, %c0_i32 : i32, i32
  }
  func.func @transform_1(%arg0: i32) -> (i32, i32) {
    %c0_i32 = arith.constant 0 : i32
    %c0_i32_0 = arith.constant 0 : i32
    %c0_i32_1 = arith.constant 0 : i32
    return %c0_i32, %c0_i32_0 : i32, i32
  }
  func.func @transform_2(%arg0: i32) -> (i32, i32) {
    %c0_i32 = arith.constant 0 : i32
    %c0_i32_0 = arith.constant 0 : i32
    %c0_i32_1 = arith.constant 0 : i32
    return %c0_i32, %c0_i32_0 : i32, i32
  }
  func.func @transform_3(%arg0: i32) -> (i32, i32) {
    %c0_i32 = arith.constant 0 : i32
    %c0_i32_0 = arith.constant 0 : i32
    %c0_i32_1 = arith.constant 0 : i32
    return %c0_i32, %c0_i32_0 : i32, i32
  }
  func.func @transform_4(%arg0: i32) -> (i32, i32) {
    %c0_i32 = arith.constant 0 : i32
    %c0_i32_0 = arith.constant 0 : i32
    %c0_i32_1 = arith.constant 0 : i32
    return %c0_i32, %c0_i32_0 : i32, i32
  }
  func.func @transform_5(%arg0: i32) -> (i32, i32) {
    %c0_i32 = arith.constant 0 : i32
    %c0_i32_0 = arith.constant 0 : i32
    %c0_i32_1 = arith.constant 0 : i32
    return %c0_i32, %c0_i32_0 : i32, i32
  }
  func.func @transform_6(%arg0: i32) -> (i32, i32) {
    %c0_i32 = arith.constant 0 : i32
    %c0_i32_0 = arith.constant 0 : i32
    %c0_i32_1 = arith.constant 0 : i32
    return %c0_i32, %c0_i32_0 : i32, i32
  }
  func.func @transform_7(%arg0: i32) -> (i32, i32) {
    %c0_i32 = arith.constant 0 : i32
    %c0_i32_0 = arith.constant 0 : i32
    return %arg0, %c0_i32 : i32, i32
  }
  func.func @transform_8(%arg0: i32) -> (i32, i32) {
    %c0_i32 = arith.constant 0 : i32
    %c0_i32_0 = arith.constant 0 : i32
    return %arg0, %c0_i32 : i32, i32
  }
}

</mosaic_0001>

<bundles_post_ra>
// kernel: mlp_forward.1
= control target key start
LH: loop header
LB: loop body
LE: loop exit
PB: predicated region body
PF: predicated region fallthrough
CT: control target
= control target key end

     0   :  { %14 = vsyncpa [#allocation3], 0  ;;  %s390_s0 = inlined_call_operand.vmem [shape: f32[8,32], index: 0, kind: input, shape index: {}]   ;;  %s391_s1 = inlined_call_operand.vmem [shape: bf16[32,64], index: 1, kind: input, shape index: {}]   ;;  %s392_s2 = inlined_call_operand.vmem [shape: f32[1,64], index: 2, kind: input, shape index: {}]   ;;  %s393_s3 = inlined_call_operand.vmem [shape: bf16[64,32], index: 3, kind: input, shape index: {}]   ;;  %s394_s4 = inlined_call_operand.vmem [shape: f32[1,32], index: 4, kind: input, shape index: {}]   ;;  %s395_s5 = inlined_call_operand.vmem [shape: bf16[32,10], index: 5, kind: input, shape index: {}]   ;;  %s396_s6 = inlined_call_operand.vmem [shape: f32[1,10], index: 6, kind: input, shape index: {}]   ;;  %s397_s7 = inlined_call_operand.hbm [shape: f32[8,10], index: 7, kind: output, shape index: {0}]   ;;  %s398_s8 = inlined_call_operand.hbm [shape: f32[8,32], index: 8, kind: output, shape index: {1}]  }
   0x1   :  { %v234_v0 = vld [vmem:[%s391_s1 + $0x8] sm:$0xff]  ;;  %v233_v1 = vld [vmem:[%s391_s1] sm:$0xff]  ;;  %v238_v2 = vld [vmem:[%s393_s3 + $0x18] sm:$0xff] }
   0x2   :  { %63 = vmatpush.bf16.msra.mxu0 %v234_v0  ;;  %v31_v3 = vld [vmem:[%s390_s0] sm:$0xff]  ;;  %116 = vmatpush.bf16.msra.mxu1 %v238_v2  ;;  %v237_v4 = vld [vmem:[%s393_s3 + $0x10] sm:$0xff] }
   0x3   :  { %15 = vsyncpa [#allocation5], 0  ;;  %v32_v5 = vpack.c.bf16 %v31_v3, %v31_v3  ;;  %vm53_vm0 = vcmask 261120   ;;  %v236_v6 = vld [vmem:[%s393_s3 + $0x8] sm:$0xff]  ;;  %v235_v7 = vld [vmem:[%s393_s3] sm:$0xff]  ;;  %vm108_vm1 = vcmask 523264  }
   0x4   :  { %v243_v8 = vld [vmem:[%s392_s2] ss:$0 sm:$0xff]  ;;  %v240_v14 = vld [vmem:[%s395_s5 + $0x8] sm:$0xff]  ;;  %s298_s2 = smov [#allocation4]   ;;  %s299_s28 = smov [#allocation2]   ;;  %vm164_vm2 = vcmask 80896  }
   0x5   :  { %157 = vmatpush.bf16.msra.mxu2 %v240_v14  ;;  %v239_v15 = vld [vmem:[%s395_s5] sm:$0xff]  ;;  %s182_s24 = sshll.u32 %s298_s2, 4  ;;  %s184_s5 = sshll.u32 %s398_s8, 4  ;;  %s183_s24 = int_to_ptr.vmem [resolvable:$true] %s182_s24  ;;  %s185_s5 = int_to_ptr.hbm [resolvable:$true] %s184_s5 }
   0x6   :  { %64 = vmatpush.bf16.msra.mxu0 %v233_v1  ;;  %117 = vmatpush.bf16.msra.mxu1 %v237_v4  ;;  %v244_v16 = vld [vmem:[%s394_s4] ss:$0 sm:$0xff]  ;;  %s171_s29 = sshll.u32 %s299_s28, 4  ;;  %s173_s10 = sshll.u32 %s397_s7, 4  ;;  %s172_s29 = int_to_ptr.vmem [resolvable:$true] %s171_s29  ;;  %s174_s10 = int_to_ptr.hbm [resolvable:$true] %s173_s10 }
   0x7   :  { %v245_v22 = vld [vmem:[%s396_s6] ss:$0 sm:$0xff] }
   0x9   :  { %206 = vmatmul.msk.bf16.vlgmr.msra.gmra.mxu0 %vm53_vm0, %v32_v5  ;;  %158 = vmatpush.bf16.msra.mxu2 %v239_v15 }
   0xa   :  { %118 = vmatpush.bf16.msra.mxu1 %v236_v6 }
   0xe   :  { %119 = vmatpush.bf16.msra.mxu1 %v235_v7 }
  0x86   :  { %v66_v9 = vpop.f32.mrf.mxu0 }
  0x87   :  { %v67_v10 = vadd.f32 %v243_v8, %v66_v9 }
  0x89   :  { %v70_v11 = vmax.f32 %v67_v10, 0.0 }
  0x8b   :  { %v71_v12 = vpack.c.bf16 %v70_v11, %v70_v11 }
  0x8d   :  { %223 = vmatmul.msk.bf16.vlgmr.msra.gmra.mxu1 %vm108_vm1, %v71_v12 }
  0x8e   :  { %v68_v13 = vpop.f32.mrf.mxu0 }
 0x10a   :  { %v121_v17 = vpop.f32.mrf.mxu1 }
 0x10b   :  { %v122_v18 = vadd.f32 %v244_v16, %v121_v17 }
 0x10d   :  { %v125_v19 = vmax.f32 %v122_v18, 0.0 }
 0x10f   :  { %126 = vst.msk [vmem:[#allocation4] sm:$0xff] %vm53_vm0, %v125_v19  ;;  %v127_v20 = vpack.c.bf16 %v125_v19, %v125_v19 }
 0x110   :  { %187 = dma.vmem_to_hbm [thread:$0]  %s183_s24, 128, %s185_s5, [#allocation5]  }
 0x111   :  { %232 = vmatmul.msk.bf16.vlgmr.msra.gmra.mxu2 %vm53_vm0, %v127_v20 }
 0x112   :  { %v123_v21 = vpop.f32.mrf.mxu1 }
 0x194   :  { %v160_v23 = vpop.f32.mrf.mxu2 }
 0x195   :  { %v161_v24 = vadd.f32 %v245_v22, %v160_v23 }
 0x197   :  { %165 = vst.msk [vmem:[#allocation2] sm:$0xff] %vm164_vm2, %v161_v24 }
 0x198   :  { %176 = dma.vmem_to_hbm [thread:$0]  %s172_s29, 128, %s174_s10, [#allocation3]  }
 0x19c   :  { %v162_v25 = vpop.f32.mrf.mxu2 }
 0x19d   :  { %294 = dma.done.wait [#allocation3], 128  }
 0x19e   :  { %295 = vsyncadd [#allocation3], 4294967168 }
 0x19f   :  { %296 = dma.done.wait [#allocation5], 128  }
 0x1a0   :  { %297 = vsyncadd [#allocation5], 4294967168 }
 0x1a1   :  { %196 = vsyncpa [#allocation3], 1 }
 0x1a2   :  { %197 = vsyncpa [#allocation5], 1 }

</bundles_post_ra>
